<compile_context>
chip_gen: v5e
topology: v5e:2x2
jax: 0.10.0
libtpu: 0.0.40
codegen_flags: <defaults>
</compile_context>

<pallas_src>
import jax
import jax.numpy as jnp
from jax.experimental import pallas as pl
from jax.experimental.pallas import tpu as pltpu


def _mask_kernel(row_ref, out_ref):
    # row_ref: (1, P*D) precomputed (mask_token + pos_embed) row, VMEM-resident
    #          across the whole grid (constant index_map).
    # out_ref: (Bt, P*D) lane-dense output tile for this grid step.
    out_ref[...] = jnp.broadcast_to(row_ref[...], out_ref.shape)


def _pick_batch_tile(B, row_bytes, itemsize, target_bytes):
    """Sublane-aligned batch tile near target_bytes; does NOT need to divide B."""
    # Sub-32-bit dtypes pack rows along sublanes: 2 rows/sublane for 16-bit,
    # 4 rows/sublane for 8-bit -> align the tile accordingly.
    if itemsize >= 4:
        align = 8
    elif itemsize == 2:
        align = 16
    else:
        align = 32

    if B <= align:
        # Single full-extent block along batch (satisfies the block-shape rule
        # by equalling the full array dim).
        return B

    want = max(1, target_bytes // max(row_bytes, 1))
    bt = min(want, B)
    bt = max(align, (bt // align) * align)

    # Keep at least 2 grid steps so the "parallel" axis can shard the store
    # stream across both TensorCores (v7x); partial last block is fine.
    if bt >= B:
        half = pl.cdiv(B, 2)
        bt = max(align, ((half + align - 1) // align) * align)
    return bt


def mask_forward(mask_token, decoder_pos_embed, B, num_patches, *,
                 out_dtype=None, target_tile_bytes=4 << 20):
    """mask_token: (1, 1, D); decoder_pos_embed: (1, P, D) with P == num_patches.

    Returns (B, P, D). `out_dtype` lets callers emit bf16 directly, halving the
    HBM write traffic (the whole cost of this op); default keeps the input
    dtype (matches the PyTorch reference).
    """
    _, P, D = decoder_pos_embed.shape
    assert P == num_patches, "broadcast in the reference requires matching num_patches"
    assert mask_token.shape == (1, 1, D)

    out_dtype = jnp.dtype(out_dtype) if out_dtype is not None else decoder_pos_embed.dtype
    N = P * D  # flat lane axis; a multiple of 128 for typical MAE shapes

    # Hoisted one-row add in XLA (O(P*D)), cast once, lane-dense flat layout.
    row = (mask_token.reshape(1, 1, D) + decoder_pos_embed).reshape(1, N)
    row = row.astype(out_dtype)

    itemsize = jnp.dtype(out_dtype).itemsize
    bt = _pick_batch_tile(B, N * itemsize, itemsize, target_tile_bytes)

    out_flat = pl.pallas_call(
        _mask_kernel,
        out_shape=jax.ShapeDtypeStruct((B, N), out_dtype),
        grid_spec=pltpu.PrefetchScalarGridSpec(
            num_scalar_prefetch=0,
            grid=(pl.cdiv(B, bt),),
            in_specs=[
                pl.BlockSpec((1, N), lambda i: (0, 0)),   # fused row (VMEM-resident)
            ],
            out_specs=pl.BlockSpec((bt, N), lambda i: (i, 0)),
        ),
        compiler_params=pltpu.CompilerParams(
            dimension_semantics=("parallel",),
        ),
    )(row)

    return out_flat.reshape(B, P, D)


if __name__ == "__main__":
    # Small, module-consistent shapes.
    B = 2
    num_patches = 8
    decoder_embed_dim = 32

    key = jax.random.PRNGKey(0)
    k_mask, k_pos = jax.random.split(key)

    # Deterministic init, matching initialize_weights(): normal(std=0.02)
    mask_token = 0.02 * jax.random.normal(
        k_mask, (1, 1, decoder_embed_dim), dtype=jnp.float32)
    decoder_pos_embed = 0.02 * jax.random.normal(
        k_pos, (1, num_patches, decoder_embed_dim), dtype=jnp.float32)

    out = mask_forward(mask_token, decoder_pos_embed, B, num_patches)
    out = jax.block_until_ready(out)

    # Reference check in plain JAX.
    ref = jnp.broadcast_to(mask_token, (B, num_patches, decoder_embed_dim)) + decoder_pos_embed
    assert out.shape == (B, num_patches, decoder_embed_dim)
    assert jnp.allclose(out, ref, atol=1e-6), "mismatch vs reference"

    # Also exercise a non-dividing, larger batch to cover the cdiv/partial-block path.
    B2 = 20
    out2 = jax.block_until_ready(
        mask_forward(mask_token, decoder_pos_embed, B2, num_patches))
    ref2 = jnp.broadcast_to(mask_token, (B2, num_patches, decoder_embed_dim)) + decoder_pos_embed
    assert jnp.allclose(out2, ref2, atol=1e-6), "mismatch vs reference (B=20)"

    print("KERNEL_OK")
</pallas_src>

<mosaic_0001>
module attributes {stable_mosaic.version = 11 : i64} {
  func.func @_mask_kernel(%arg0: i32, %arg1: memref<1x256xf32, #tpu.memory_space<vmem>>, %arg2: memref<2x256xf32, #tpu.memory_space<vmem>>) attributes {dimension_semantics = [#tpu.dimension_semantics<parallel>], iteration_bounds = array<i64: 1>, scalar_prefetch = 0 : i64, scratch_operands = 0 : i64, tpu.core_type = #tpu.core_type<tc>, window_params = [{pipeline_mode = #tpu.pipeline_mode<synchronous>, transform_indices = @transform_0, window_bounds = array<i64: 1, 256>}, {transform_indices = @transform_1, window_bounds = array<i64: 2, 256>}]} {
    %c0 = arith.constant 0 : index
    %c0_0 = arith.constant 0 : index
    %0 = vector.load %arg1[%c0, %c0_0] : memref<1x256xf32, #tpu.memory_space<vmem>>, vector<1x256xf32>
    %1 = vector.shape_cast %0 : vector<1x256xf32> to vector<1x256xf32>
    %2 = vector.broadcast %1 : vector<1x256xf32> to vector<2x256xf32>
    %c0_1 = arith.constant 0 : index
    %c0_2 = arith.constant 0 : index
    %3 = vector.load %arg2[%c0_1, %c0_2] : memref<2x256xf32, #tpu.memory_space<vmem>>, vector<2x256xf32>
    tpu.vector_store %arg2[%c0_1, %c0_2], %2 {strides = array<i32>} : memref<2x256xf32, #tpu.memory_space<vmem>>, vector<2x256xf32>,
    return
  }
  func.func @transform_0(%arg0: i32) -> (i32, i32) {
    %c0_i32 = arith.constant 0 : i32
    %c0_i32_0 = arith.constant 0 : i32
    %c0_i32_1 = arith.constant 0 : i32
    return %c0_i32, %c0_i32_0 : i32, i32
  }
  func.func @transform_1(%arg0: i32) -> (i32, i32) {
    %c0_i32 = arith.constant 0 : i32
    %c0_i32_0 = arith.constant 0 : i32
    return %arg0, %c0_i32 : i32, i32
  }
}

</mosaic_0001>

<bundles_post_ra>
// kernel: tpu_custom_call.1
= control target key start
LH: loop header
LB: loop body
LE: loop exit
PB: predicated region body
PF: predicated region fallthrough
CT: control target
= control target key end

     0   :  { %6 = vsyncpa [#allocation3], 0  ;;  %s121_s0 = inlined_call_operand.hbm [shape: f32[1,256], index: 0, kind: input, shape index: {}]   ;;  %s122_s1 = inlined_call_operand.hbm [shape: f32[2,256], index: 1, kind: output, shape index: {}]  }
   0x1   :  { %7 = vsyncpa [#allocation4], 0  ;;  %s13_s8 = sshll.u32 %s121_s0, 4  ;;  %s103_s9 = smov [#allocation2]   ;;  %s14_s8 = int_to_ptr.hbm [resolvable:$true] %s13_s8 }
   0x2   :  { %s15_s10 = sshll.u32 %s103_s9, 4  ;;  %s16_s10 = int_to_ptr.vmem [resolvable:$true] %s15_s10 }
   0x3   :  { %18 = dma.hbm_to_vmem [thread:$0]  %s14_s8, 32, %s16_s10, [#allocation3]  }
   0x4   :  { %99 = dma.done.wait [#allocation3], 32  }
   0x5   :  { %100 = vsyncadd [#allocation3], 4294967264  ;;  %v23_v0 = vld [vmem:[#allocation2] sm:$0x3]  ;;  %s104_s11 = smov [#allocation5]   ;;  %s39_s15 = sshll.u32 %s122_s1, 4  ;;  %s40_s15 = int_to_ptr.hbm [resolvable:$true] %s39_s15 }
   0x6   :  { %v25_v1 = vperm.slane %v23_v0, 0  ;;  %v26_v2 = vperm.slane %v23_v0, 1  ;;  %s37_s12 = sshll.u32 %s104_s11, 4  ;;  %vm28_vm0 = vcmask 1041408   ;;  %s38_s12 = int_to_ptr.vmem [resolvable:$true] %s37_s12 }
   0x8   :  { %v27_v3 = vrot.slane %v26_v2, 6 }
   0xa   :  { %v29_v4 = vsel %vm28_vm0, %v25_v1, %v27_v3 }
   0xb   :  { %31 = vst [vmem:[#allocation5] sm:$0xf] %v29_v4 }
   0xc   :  { %42 = dma.vmem_to_hbm [thread:$0]  %s38_s12, 64, %s40_s15, [#allocation4]  }
   0xd   :  { %101 = dma.done.wait [#allocation4], 64  }
   0xe   :  { %102 = vsyncadd [#allocation4], 4294967232 }
   0xf   :  { %47 = vsyncpa [#allocation3], 1 }
  0x10   :  { %48 = vsyncpa [#allocation4], 1 }

</bundles_post_ra>
